<compile_context>
chip_gen: v5e
topology: v5e:2x2
jax: 0.10.0
libtpu: 0.0.40
codegen_flags: <defaults>
</compile_context>

<pallas_src>
from functools import partial

import jax
import jax.numpy as jnp
from jax import lax
from jax.experimental import pallas as pl
from jax.experimental.pallas import tpu as pltpu

L2_REG = 0.2  # NPairLoss(l2_reg=0.2) default; fixed deterministically in-script.


def _round_up(x, m):
    return ((x + m - 1) // m) * m


def _npair_loss_kernel(a_ref, p_ref, o_ref, *, n_real, l2_reg):
    """One anchor-row block of the N-pair loss.

    a_ref : (tm, E)     anchor rows of this block (native dtype -> MXU operand)
    p_ref : (n_pad, E)  all (zero-padded) positives, VMEM-resident across grid
    o_ref : (1, 8, 128) lane-dense per-block partial sum (scalar broadcast)
    """
    i = pl.program_id(0)
    tm = a_ref.shape[0]

    a = a_ref[...]                                   # (tm, E), native dtype
    p = p_ref[...]                                   # (n_pad, E), native dtype

    # G[r, j] = <a_r, p_j> on the MXU, contracting the last dims directly
    # (transposed-RHS matmul, no P.T materialization), f32 accumulation.
    g = lax.dot_general(a, p, (((1,), (1,)), ((), ())),
                        preferred_element_type=jnp.float32)          # (tm, n_pad)

    # Positive rows aligned with this block's anchors, sliced from the
    # resident p_ref (no extra per-step DMA).  In-bounds: n_pad % tm == 0.
    row0 = pl.multiple_of(i * tm, 8)
    pd = p_ref[pl.ds(row0, tm), :]                                    # (tm, E)

    a32 = a.astype(jnp.float32)
    pd32 = pd.astype(jnp.float32)

    # diag_r = <a_r, p_r> straight from the embeddings: O(tm*E), no (n,n) pass.
    diag = jnp.sum(a32 * pd32, axis=1, keepdims=True)                 # (tm, 1)

    # log(1 + sum_{j != r} exp(<a_r, p_j - p_r>)) == logsumexp_j(G - diag):
    # the j == r column contributes exp(0) = 1 so no exclusion mask is needed.
    # Padded positive *columns* (j >= n_real) are excluded; stabilized with a
    # per-row max taken over valid columns only (all selects, so inf-safe).
    x = g - diag                                                      # (tm, n_pad)
    col_valid = lax.broadcasted_iota(jnp.int32, x.shape, 1) < n_real
    m = jnp.max(jnp.where(col_valid, x, -jnp.inf), axis=1, keepdims=True)
    s = jnp.sum(jnp.where(col_valid, jnp.exp(x - m), 0.0),
                axis=1, keepdims=True)
    lse = m + jnp.log(s)                                              # (tm, 1)

    # Padded anchor *rows* are excluded from the reduction.
    row_ids = row0 + lax.broadcasted_iota(jnp.int32, (tm, 1), 0)
    row_valid = row_ids < n_real
    npair_part = jnp.sum(jnp.where(row_valid, lse, 0.0))

    # l2 regularizer contribution of this block: sum(a^2 + p^2).
    # Padded rows are exact zeros, so they contribute nothing.
    l2_part = jnp.sum(a32 * a32) + jnp.sum(pd32 * pd32)

    partial_sum = npair_part + l2_reg * l2_part
    o_ref[...] = jnp.full(o_ref.shape, partial_sum, dtype=o_ref.dtype)


def _vmem_capacity_bytes():
    """Per-TensorCore VMEM capacity for this generation (trace-time query)."""
    try:
        cap = getattr(pltpu.get_tpu_info(), "vmem_capacity_bytes", None)
        if cap:
            return int(cap)
    except Exception:
        pass
    return 64 * 1024 * 1024  # conservative fallback: v7x per-core VMEM


def _pick_row_block(n, E, itemsize, vmem_cap):
    """MXU-friendly anchor-row tile (<=256), shrunk until the working set
    (resident P + double-buffered A tile + f32 Gram/exp temps) fits ~half of
    this generation's VMEM."""
    n8 = _round_up(max(n, 1), 8)
    resident = n8 * E * itemsize
    budget = vmem_cap // 2
    tm = 256
    while tm > 8:
        need = resident + 2 * tm * E * itemsize + 4 * tm * (3 * n8 + 3 * E)
        if need <= budget:
            break
        tm //= 2
    return max(8, min(tm, n8))


def npair_loss(embeddings, t_labels=None, l2_reg=L2_REG):
    """Pallas implementation of NPairLoss.forward (t_labels only fixes B)."""
    del t_labels
    B, E = embeddings.shape
    assert B % 2 == 0, "batch size must be even (anchor/positive pairs)"
    n = B // 2

    # Even rows are anchors, odd rows are positives (layout plumbing in XLA).
    anchors = embeddings[0::2]      # (n, E)
    positives = embeddings[1::2]    # (n, E)

    itemsize = jnp.dtype(embeddings.dtype).itemsize
    vmem_cap = _vmem_capacity_bytes()
    tm = _pick_row_block(n, E, itemsize, vmem_cap)
    n_pad = _round_up(n, tm)
    num_blocks = n_pad // tm

    if n_pad != n:
        pad = ((0, n_pad - n), (0, 0))
        anchors = jnp.pad(anchors, pad)
        positives = jnp.pad(positives, pad)

    # TODO(synk): for huge n where the (n_pad, E) positives no longer fit VMEM
    # (notably v7x's 64 MiB), add a second grid axis tiling the Gram columns
    # with a running (tm, 1) logsumexp scratch instead of the resident layout.

    working = (n_pad * E * itemsize                 # resident positives (1 buf)
               + 2 * tm * E * itemsize              # double-buffered anchor tile
               + 4 * tm * (3 * n_pad + 3 * E)       # f32 Gram / exp / casts
               + 2 * 8 * 128 * 4)                   # output block
    vmem_limit = int(min(max(int(1.5 * working), 32 * 1024 * 1024),
                         int(0.85 * vmem_cap)))

    cost = pl.CostEstimate(
        flops=2 * n_pad * n_pad * E + 10 * n_pad * E + 6 * n_pad * n_pad,
        transcendentals=n_pad * n_pad + n_pad,
        bytes_accessed=2 * n_pad * E * itemsize + num_blocks * 8 * 128 * 4,
    )

    kernel = partial(_npair_loss_kernel, n_real=n, l2_reg=float(l2_reg))

    def call(p_spec):
        return pl.pallas_call(
            kernel,
            out_shape=jax.ShapeDtypeStruct((num_blocks, 8, 128), jnp.float32),
            grid_spec=pltpu.PrefetchScalarGridSpec(
                num_scalar_prefetch=0,
                grid=(num_blocks,),
                in_specs=[
                    pl.BlockSpec((tm, E), lambda i: (i, 0)),   # anchor rows, block i
                    p_spec,                                    # all positives, resident
                ],
                out_specs=pl.BlockSpec((1, 8, 128), lambda i: (i, 0, 0)),
            ),
            compiler_params=pltpu.CompilerParams(
                # Each block writes its own partial -> no cross-step carry, so
                # the axis can be sharded across v7x's two TensorCores.
                dimension_semantics=("parallel",),
                vmem_limit_bytes=vmem_limit,
            ),
            cost_estimate=cost,
        )(anchors, positives)

    try:
        # Constant index_map -> single-buffer the resident positives
        # (double-buffering it only wastes n_pad*E*itemsize of VMEM).
        out = call(pl.BlockSpec((n_pad, E), lambda i: (0, 0),
                                pipeline_mode=pl.Buffered(1)))
    except Exception:
        out = call(pl.BlockSpec((n_pad, E), lambda i: (0, 0)))

    # Per-block partials -> final scalar in the wrapper; the same 1/n
    # normalization applies to both the n-pair mean and the l2 term.
    return jnp.sum(out[:, 0, 0]) / n


def _reference(embeddings, l2_reg=L2_REG):
    """Pure-JAX mirror of the PyTorch NPairLoss.forward, for verification."""
    B, _ = embeddings.shape
    n = B // 2
    anchors = embeddings[0::2]
    positives = embeddings[1::2]
    terms = []
    for i in range(n):
        neg_idx = jnp.array([j for j in range(n) if j != i], dtype=jnp.int32)
        negatives = positives[neg_idx]                      # (n-1, E)
        x = (negatives - positives[i]) @ anchors[i]         # (n-1,)
        terms.append(jnp.log(1.0 + jnp.sum(jnp.exp(x))))
    n_pair = jnp.mean(jnp.stack(terms))
    l2 = jnp.sum(anchors ** 2 + positives ** 2) / n
    return n_pair + l2_reg * l2


if __name__ == "__main__":
    key = jax.random.PRNGKey(0)
    B, E = 8, 32                                    # small even batch of pairs
    k_x, k_t = jax.random.split(key)
    embeddings = jax.random.normal(k_x, (B, E), dtype=jnp.float32)
    t_labels = jax.random.randint(k_t, (B,), 0, 4)  # unused by the forward pass

    loss = jax.block_until_ready(npair_loss(embeddings, t_labels))
    ref = jax.block_until_ready(_reference(embeddings))
    assert jnp.allclose(loss, ref, rtol=1e-5, atol=1e-5), (loss, ref)

    print("KERNEL_OK")
</pallas_src>

<mosaic_0001>
module attributes {stable_mosaic.version = 11 : i64} {
  func.func @_npair_loss_kernel(%arg0: i32, %arg1: memref<8x32xf32, #tpu.memory_space<vmem>>, %arg2: memref<8x32xf32, #tpu.memory_space<vmem>>, %arg3: memref<1x8x128xf32, #tpu.memory_space<vmem>>) attributes {dimension_semantics = [#tpu.dimension_semantics<parallel>], iteration_bounds = array<i64: 1>, scalar_prefetch = 0 : i64, scratch_operands = 0 : i64, tpu.core_type = #tpu.core_type<tc>, window_params = [{transform_indices = @transform_0, window_bounds = array<i64: 8, 32>}, {pipeline_mode = #tpu.pipeline_mode<synchronous>, transform_indices = @transform_1, window_bounds = array<i64: 8, 32>}, {transform_indices = @transform_2, window_bounds = array<i64: 1, 8, 128>}]} {
    %c0 = arith.constant 0 : index
    %c0_0 = arith.constant 0 : index
    %0 = vector.load %arg1[%c0, %c0_0] : memref<8x32xf32, #tpu.memory_space<vmem>>, vector<8x32xf32>
    %c0_1 = arith.constant 0 : index
    %c0_2 = arith.constant 0 : index
    %1 = vector.load %arg2[%c0_1, %c0_2] : memref<8x32xf32, #tpu.memory_space<vmem>>, vector<8x32xf32>
    %cst = arith.constant dense<0.000000e+00> : vector<8x8xf32>
    %2 = tpu.matmul %0, %1, %cst {dimension_numbers = #tpu.dot_dimension_numbers<[1], [1], [0], [0], [0, 0, 1, 0], [], []>} : vector<8x32xf32>, vector<8x32xf32>, vector<8x8xf32> -> vector<8x8xf32>
    %c8_i32 = arith.constant 8 : i32
    %3 = arith.muli %arg0, %c8_i32 : i32
    %4 = tpu.assume_multiple %3, 8 : i32
    %5 = arith.index_cast %4 : i32 to index
    %c0_3 = arith.constant 0 : index
    %6 = vector.load %arg2[%5, %c0_3] : memref<8x32xf32, #tpu.memory_space<vmem>>, vector<8x32xf32>
    %7 = arith.mulf %0, %6 : vector<8x32xf32>
    %cst_4 = arith.constant dense<0.000000e+00> : vector<8xf32>
    %8 = vector.multi_reduction <add>, %7, %cst_4 [1] : vector<8x32xf32> to vector<8xf32>
    %9 = vector.shape_cast %8 : vector<8xf32> to vector<8x1xf32>
    %10 = vector.broadcast %9 : vector<8x1xf32> to vector<8x8xf32>
    %11 = arith.subf %2, %10 : vector<8x8xf32>
    %12 = tpu.iota {dimensions = array<i32: 1>} : vector<8x8xi32>
    %c4_i32 = arith.constant 4 : i32
    %13 = vector.broadcast %c4_i32 : i32 to vector<8x8xi32>
    %14 = arith.cmpi slt, %12, %13 : vector<8x8xi32>
    %cst_5 = arith.constant 0xFF800000 : f32
    %15 = vector.broadcast %cst_5 : f32 to vector<8x8xf32>
    %16 = arith.select %14, %11, %15 : vector<8x8xi1>, vector<8x8xf32>
    %cst_6 = arith.constant dense<0xFF800000> : vector<8xf32>
    %17 = vector.multi_reduction <maximumf>, %16, %cst_6 [1] : vector<8x8xf32> to vector<8xf32>
    %18 = vector.shape_cast %17 : vector<8xf32> to vector<8x1xf32>
    %19 = vector.broadcast %18 : vector<8x1xf32> to vector<8x8xf32>
    %20 = arith.subf %11, %19 : vector<8x8xf32>
    %21 = math.exp %20 : vector<8x8xf32>
    %cst_7 = arith.constant 0.000000e+00 : f32
    %22 = vector.broadcast %cst_7 : f32 to vector<8x8xf32>
    %23 = arith.select %14, %21, %22 : vector<8x8xi1>, vector<8x8xf32>
    %cst_8 = arith.constant dense<0.000000e+00> : vector<8xf32>
    %24 = vector.multi_reduction <add>, %23, %cst_8 [1] : vector<8x8xf32> to vector<8xf32>
    %25 = vector.shape_cast %24 : vector<8xf32> to vector<8x1xf32>
    %26 = math.log %25 : vector<8x1xf32>
    %27 = arith.addf %18, %26 : vector<8x1xf32>
    %28 = tpu.iota {dimensions = array<i32: 0>} : vector<8x1xi32>
    %29 = vector.broadcast %4 : i32 to vector<8x1xi32>
    %30 = arith.addi %29, %28 : vector<8x1xi32>
    %c4_i32_9 = arith.constant 4 : i32
    %31 = vector.broadcast %c4_i32_9 : i32 to vector<8x1xi32>
    %32 = arith.cmpi slt, %30, %31 : vector<8x1xi32>
    %cst_10 = arith.constant 0.000000e+00 : f32
    %33 = vector.broadcast %cst_10 : f32 to vector<8x1xf32>
    %34 = arith.select %32, %27, %33 : vector<8x1xi1>, vector<8x1xf32>
    %35 = vector.shape_cast %34 : vector<8x1xf32> to vector<1x8x1xf32>
    %cst_11 = arith.constant dense<0.000000e+00> : vector<1xf32>
    %36 = vector.multi_reduction <add>, %35, %cst_11 [1, 2] : vector<1x8x1xf32> to vector<1xf32>
    %37 = vector.shape_cast %36 : vector<1xf32> to vector<1x1x1xf32>
    %38 = vector.extract %37[0, 0, 0] : f32 from vector<1x1x1xf32>
    %39 = arith.mulf %0, %0 : vector<8x32xf32>
    %40 = vector.shape_cast %39 : vector<8x32xf32> to vector<1x8x32xf32>
    %cst_12 = arith.constant dense<0.000000e+00> : vector<1xf32>
    %41 = vector.multi_reduction <add>, %40, %cst_12 [1, 2] : vector<1x8x32xf32> to vector<1xf32>
    %42 = vector.shape_cast %41 : vector<1xf32> to vector<1x1x1xf32>
    %43 = vector.extract %42[0, 0, 0] : f32 from vector<1x1x1xf32>
    %44 = arith.mulf %6, %6 : vector<8x32xf32>
    %45 = vector.shape_cast %44 : vector<8x32xf32> to vector<1x8x32xf32>
    %cst_13 = arith.constant dense<0.000000e+00> : vector<1xf32>
    %46 = vector.multi_reduction <add>, %45, %cst_13 [1, 2] : vector<1x8x32xf32> to vector<1xf32>
    %47 = vector.shape_cast %46 : vector<1xf32> to vector<1x1x1xf32>
    %48 = vector.extract %47[0, 0, 0] : f32 from vector<1x1x1xf32>
    %49 = arith.addf %43, %48 : f32
    %cst_14 = arith.constant 2.000000e-01 : f32
    %50 = arith.mulf %cst_14, %49 : f32
    %51 = arith.addf %38, %50 : f32
    %52 = vector.broadcast %51 : f32 to vector<1x8x128xf32>
    %c0_15 = arith.constant 0 : index
    %c0_16 = arith.constant 0 : index
    %c0_17 = arith.constant 0 : index
    %53 = vector.load %arg3[%c0_15, %c0_16, %c0_17] : memref<1x8x128xf32, #tpu.memory_space<vmem>>, vector<1x8x128xf32>
    tpu.vector_store %arg3[%c0_15, %c0_16, %c0_17], %52 {strides = array<i32>} : memref<1x8x128xf32, #tpu.memory_space<vmem>>, vector<1x8x128xf32>,
    return
  }
  func.func @transform_0(%arg0: i32) -> (i32, i32) {
    %c0_i32 = arith.constant 0 : i32
    %c0_i32_0 = arith.constant 0 : i32
    return %arg0, %c0_i32 : i32, i32
  }
  func.func @transform_1(%arg0: i32) -> (i32, i32) {
    %c0_i32 = arith.constant 0 : i32
    %c0_i32_0 = arith.constant 0 : i32
    %c0_i32_1 = arith.constant 0 : i32
    return %c0_i32, %c0_i32_0 : i32, i32
  }
  func.func @transform_2(%arg0: i32) -> (i32, i32, i32) {
    %c0_i32 = arith.constant 0 : i32
    %c0_i32_0 = arith.constant 0 : i32
    %c0_i32_1 = arith.constant 0 : i32
    return %arg0, %c0_i32, %c0_i32_0 : i32, i32, i32
  }
}

module attributes {stable_mosaic.version = 11 : i64} {
  func.func @_npair_loss_kernel(%arg0: i32, %arg1: memref<8x32xf32, #tpu.memory_space<vmem>>, %arg2: memref<8x32xf32, #tpu.memory_space<vmem>>, %arg3: memref<1x8x128xf32, #tpu.memory_space<vmem>>) attributes {dimension_semantics = [#tpu.dimension_semantics<parallel>], iteration_bounds = array<i64: 1>, scalar_prefetch = 0 : i64, scratch_operands = 0 : i64, tpu.core_type = #tpu.core_type<tc>, window_params = [{transform_indices = @transform_0, window_bounds = array<i64: 8, 32>}, {pipeline_mode = #tpu.pipeline_mode<synchronous>, transform_indices = @transform_1, window_bounds = array<i64: 8, 32>}, {transform_indices = @transform_2, window_bounds = array<i64: 1, 8, 128>}]} {
    %c0 = arith.constant 0 : index
    %c0_0 = arith.constant 0 : index
    %0 = vector.load %arg1[%c0, %c0_0] : memref<8x32xf32, #tpu.memory_space<vmem>>, vector<8x32xf32>
    %c0_1 = arith.constant 0 : index
    %c0_2 = arith.constant 0 : index
    %1 = vector.load %arg2[%c0_1, %c0_2] : memref<8x32xf32, #tpu.memory_space<vmem>>, vector<8x32xf32>
    %cst = arith.constant dense<0.000000e+00> : vector<8x8xf32>
    %2 = tpu.matmul %0, %1, %cst {dimension_numbers = #tpu.dot_dimension_numbers<[1], [1], [0], [0], [0, 0, 1, 0], [], []>} : vector<8x32xf32>, vector<8x32xf32>, vector<8x8xf32> -> vector<8x8xf32>
    %c8_i32 = arith.constant 8 : i32
    %3 = arith.muli %arg0, %c8_i32 : i32
    %4 = tpu.assume_multiple %3, 8 : i32
    %5 = arith.index_cast %4 : i32 to index
    %c0_3 = arith.constant 0 : index
    %6 = vector.load %arg2[%5, %c0_3] : memref<8x32xf32, #tpu.memory_space<vmem>>, vector<8x32xf32>
    %7 = arith.mulf %0, %6 : vector<8x32xf32>
    %cst_4 = arith.constant dense<0.000000e+00> : vector<8xf32>
    %8 = vector.multi_reduction <add>, %7, %cst_4 [1] : vector<8x32xf32> to vector<8xf32>
    %9 = vector.shape_cast %8 : vector<8xf32> to vector<8x1xf32>
    %10 = vector.broadcast %9 : vector<8x1xf32> to vector<8x8xf32>
    %11 = arith.subf %2, %10 : vector<8x8xf32>
    %12 = tpu.iota {dimensions = array<i32: 1>} : vector<8x8xi32>
    %c4_i32 = arith.constant 4 : i32
    %13 = vector.broadcast %c4_i32 : i32 to vector<8x8xi32>
    %14 = arith.cmpi slt, %12, %13 : vector<8x8xi32>
    %cst_5 = arith.constant 0xFF800000 : f32
    %15 = vector.broadcast %cst_5 : f32 to vector<8x8xf32>
    %16 = arith.select %14, %11, %15 : vector<8x8xi1>, vector<8x8xf32>
    %cst_6 = arith.constant dense<0xFF800000> : vector<8xf32>
    %17 = vector.multi_reduction <maximumf>, %16, %cst_6 [1] : vector<8x8xf32> to vector<8xf32>
    %18 = vector.shape_cast %17 : vector<8xf32> to vector<8x1xf32>
    %19 = vector.broadcast %18 : vector<8x1xf32> to vector<8x8xf32>
    %20 = arith.subf %11, %19 : vector<8x8xf32>
    %21 = math.exp %20 : vector<8x8xf32>
    %cst_7 = arith.constant 0.000000e+00 : f32
    %22 = vector.broadcast %cst_7 : f32 to vector<8x8xf32>
    %23 = arith.select %14, %21, %22 : vector<8x8xi1>, vector<8x8xf32>
    %cst_8 = arith.constant dense<0.000000e+00> : vector<8xf32>
    %24 = vector.multi_reduction <add>, %23, %cst_8 [1] : vector<8x8xf32> to vector<8xf32>
    %25 = vector.shape_cast %24 : vector<8xf32> to vector<8x1xf32>
    %26 = math.log %25 : vector<8x1xf32>
    %27 = arith.addf %18, %26 : vector<8x1xf32>
    %28 = tpu.iota {dimensions = array<i32: 0>} : vector<8x1xi32>
    %29 = vector.broadcast %4 : i32 to vector<8x1xi32>
    %30 = arith.addi %29, %28 : vector<8x1xi32>
    %c4_i32_9 = arith.constant 4 : i32
    %31 = vector.broadcast %c4_i32_9 : i32 to vector<8x1xi32>
    %32 = arith.cmpi slt, %30, %31 : vector<8x1xi32>
    %cst_10 = arith.constant 0.000000e+00 : f32
    %33 = vector.broadcast %cst_10 : f32 to vector<8x1xf32>
    %34 = arith.select %32, %27, %33 : vector<8x1xi1>, vector<8x1xf32>
    %35 = vector.shape_cast %34 : vector<8x1xf32> to vector<1x8x1xf32>
    %cst_11 = arith.constant dense<0.000000e+00> : vector<1xf32>
    %36 = vector.multi_reduction <add>, %35, %cst_11 [1, 2] : vector<1x8x1xf32> to vector<1xf32>
    %37 = vector.shape_cast %36 : vector<1xf32> to vector<1x1x1xf32>
    %38 = vector.extract %37[0, 0, 0] : f32 from vector<1x1x1xf32>
    %39 = arith.mulf %0, %0 : vector<8x32xf32>
    %40 = vector.shape_cast %39 : vector<8x32xf32> to vector<1x8x32xf32>
    %cst_12 = arith.constant dense<0.000000e+00> : vector<1xf32>
    %41 = vector.multi_reduction <add>, %40, %cst_12 [1, 2] : vector<1x8x32xf32> to vector<1xf32>
    %42 = vector.shape_cast %41 : vector<1xf32> to vector<1x1x1xf32>
    %43 = vector.extract %42[0, 0, 0] : f32 from vector<1x1x1xf32>
    %44 = arith.mulf %6, %6 : vector<8x32xf32>
    %45 = vector.shape_cast %44 : vector<8x32xf32> to vector<1x8x32xf32>
    %cst_13 = arith.constant dense<0.000000e+00> : vector<1xf32>
    %46 = vector.multi_reduction <add>, %45, %cst_13 [1, 2] : vector<1x8x32xf32> to vector<1xf32>
    %47 = vector.shape_cast %46 : vector<1xf32> to vector<1x1x1xf32>
    %48 = vector.extract %47[0, 0, 0] : f32 from vector<1x1x1xf32>
    %49 = arith.addf %43, %48 : f32
    %cst_14 = arith.constant 2.000000e-01 : f32
    %50 = arith.mulf %cst_14, %49 : f32
    %51 = arith.addf %38, %50 : f32
    %52 = vector.broadcast %51 : f32 to vector<1x8x128xf32>
    %c0_15 = arith.constant 0 : index
    %c0_16 = arith.constant 0 : index
    %c0_17 = arith.constant 0 : index
    %53 = vector.load %arg3[%c0_15, %c0_16, %c0_17] : memref<1x8x128xf32, #tpu.memory_space<vmem>>, vector<1x8x128xf32>
    tpu.vector_store %arg3[%c0_15, %c0_16, %c0_17], %52 {strides = array<i32>} : memref<1x8x128xf32, #tpu.memory_space<vmem>>, vector<1x8x128xf32>,
    return
  }
  func.func @transform_0(%arg0: i32) -> (i32, i32) {
    %c0_i32 = arith.constant 0 : i32
    %c0_i32_0 = arith.constant 0 : i32
    return %arg0, %c0_i32 : i32, i32
  }
  func.func @transform_1(%arg0: i32) -> (i32, i32) {
    %c0_i32 = arith.constant 0 : i32
    %c0_i32_0 = arith.constant 0 : i32
    %c0_i32_1 = arith.constant 0 : i32
    return %c0_i32, %c0_i32_0 : i32, i32
  }
  func.func @transform_2(%arg0: i32) -> (i32, i32, i32) {
    %c0_i32 = arith.constant 0 : i32
    %c0_i32_0 = arith.constant 0 : i32
    %c0_i32_1 = arith.constant 0 : i32
    return %arg0, %c0_i32, %c0_i32_0 : i32, i32, i32
  }
}

</mosaic_0001>

<bundles_post_ra>
// kernel: tpu_custom_call.1
= control target key start
LH: loop header
LB: loop body
LE: loop exit
PB: predicated region body
PF: predicated region fallthrough
CT: control target
= control target key end

     0   :  { %7 = vsyncpa [#allocation3], 0  ;;  %s282_s0 = inlined_call_operand.hbm [shape: f32[8,32], index: 0, kind: input, shape index: {}]   ;;  %s283_s1 = inlined_call_operand.hbm [shape: f32[8,32], index: 1, kind: input, shape index: {}]   ;;  %s284_s2 = inlined_call_operand.hbm [shape: f32[1,8,128], index: 2, kind: output, shape index: {}]  }
   0x1   :  { %8 = vsyncpa [#allocation6], 0 }
   0x2   :  { %9 = vsyncpa [#allocation4], 0  ;;  %s15_s11 = sshll.u32 %s282_s0, 4  ;;  %s250_s12 = smov [#allocation2]   ;;  %s16_s11 = int_to_ptr.hbm [resolvable:$true] %s15_s11 }
   0x3   :  { %s17_s13 = sshll.u32 %s250_s12, 4  ;;  %s26_s16 = sshll.u32 %s283_s1, 4  ;;  %s18_s13 = int_to_ptr.vmem [resolvable:$true] %s17_s13  ;;  %s27_s16 = int_to_ptr.hbm [resolvable:$true] %s26_s16 }
   0x4   :  { %20 = dma.hbm_to_vmem [thread:$0]  %s16_s11, 128, %s18_s13, [#allocation3]  }
   0x5   :  { %s251_s17 = smov [#allocation5]  }
   0x6   :  { %s28_s18 = sshll.u32 %s251_s17, 4  ;;  %s29_s18 = int_to_ptr.vmem [resolvable:$true] %s28_s18 }
   0x7   :  { %31 = dma.hbm_to_vmem [thread:$0]  %s27_s16, 128, %s29_s18, [#allocation6]  }
   0x8   :  { %244 = dma.done.wait [#allocation3], 128  }
   0x9   :  { %245 = vsyncadd [#allocation3], 4294967168 }
   0xa   :  { %246 = dma.done.wait [#allocation6], 128  }
   0xb   :  { %247 = vsyncadd [#allocation6], 4294967168  ;;  %vm42_vm0 = vcmask 261120   ;;  %v41_v0 = vld [vmem:[#allocation5] sm:$0xff]  ;;  %v40_v1 = vld [vmem:[#allocation2] sm:$0xff]  ;;  %v77_v4 = vlaneseq  ;;  %vm81_vm2 = vcmask 64512  }
   0xc   :  { %157 = vmatpush.xpose.msk.msra.mxu0 %vm42_vm0, %v41_v0  ;;  %v72_v2 = vmul.f32 %v41_v0, %v40_v1  ;;  %v112_v11 = vmul.f32 %v40_v1, %v40_v1  ;;  %v123_v19 = vmul.f32 %v41_v0, %v41_v0  ;;  %vm101_vm4 = vcmask 7168   ;;  %s252_s21 = smov [#allocation7]   ;;  %s146_s26 = sshll.u32 %s284_s2, 4  ;;  %s147_s26 = int_to_ptr.hbm [resolvable:$true] %s146_s26 }
   0xd   :  { %v78_v5 = vand.u32 127, %v77_v4  ;;  %v96_v22 = vshrl.u32 %v77_v4, 7  ;;  %s144_s22 = sshll.u32 %s252_s21, 4  ;;  %s145_s22 = int_to_ptr.vmem [resolvable:$true] %s144_s22 }
   0xe   :  { %v73_v3 = vsel %vm42_vm0, %v72_v2, 0.0  ;;  %v113_v12 = vsel %vm42_vm0, %v112_v11, 0.0  ;;  %v124_v20 = vsel %vm42_vm0, %v123_v19, 0.0 }
   0xf   :  { %158 = vmatmul.msk.f32.vlgmr.msra.gmra.mxu0 %vm42_vm0, %v40_v1  ;;  %74 = vadd.xlane.f32.xlu0 %v73_v3  ;;  %vm79_vm1 = vcmp.lt.s32.totalorder %v78_v5, 4  ;;  %vm99_vm3 = vcmp.lt.s32.totalorder %v96_v22, 4 }
  0x10   :  { %114 = vadd.xlane.f32.xlu2 %v113_v12 }
  0x18   :  { %125 = vadd.xlane.f32.xlu2 %v124_v20 }
  0x82   :  { %v75_v6 = vpop.xlane.xlu0 %74 }
  0x83   :  { %v115_v28 = vpop.xlane.xlu2 %114 }
  0x84   :  { %v116_v30 = vrot.slane %v115_v28, 4 }
  0x86   :  { %v117_v32 = vadd.f32 %v116_v30, %v115_v28 }
  0x88   :  { %v118_v34 = vrot.slane %v117_v32, 2 }
  0x8a   :  { %v119_v39 = vadd.f32 %v118_v34, %v117_v32 }
  0x8b   :  { %v126_v29 = vpop.xlane.xlu2 %125 }
  0x8c   :  { %v66_v7 = vpop.f32.mrf.mxu0  ;;  %v127_v31 = vrot.slane %v126_v29, 4  ;;  %v120_v43 = vrot.slane %v119_v39, 1 }
  0x8d   :  { %v76_v8 = vsub.f32 %v66_v7, %v75_v6 }
  0x8e   :  { %v128_v33 = vadd.f32 %v127_v31, %v126_v29  ;;  %v121_v47 = vadd.f32 %v120_v43, %v119_v39 }
  0x8f   :  { %v80_v9 = vsel %vm79_vm1, %v76_v8, -inf }
  0x90   :  { %v82_v10 = vsel %vm81_vm2, %v80_v9, -inf  ;;  %v129_v36 = vrot.slane %v128_v33, 2 }
  0x91   :  { %83 = vmax.xlane.f32.xlu0 %v82_v10 }
  0x92   :  { %v130_v40 = vadd.f32 %v129_v36, %v128_v33 }
  0x94   :  { %v131_v45 = vrot.slane %v130_v40, 1 }
  0x96   :  { %v132_v48 = vadd.f32 %v131_v45, %v130_v40 }
 0x104   :  { %v84_v13 = vpop.xlane.xlu0 %83 }
 0x105   :  { %v85_v14 = vsub.f32 %v76_v8, %v84_v13 }
 0x107   :  { %v86_v15 = vmul.f32 1.442695, %v85_v14 }
 0x109   :  { %168 = vpow2.f32 %v86_v15 }
 0x10f   :  { %v169_v16 = vpop.eup %168 }
 0x110   :  { %v88_v17 = vsel %vm79_vm1, %v169_v16, 0.0 }
 0x111   :  { %v89_v18 = vsel %vm81_vm2, %v88_v17, 0.0 }
 0x112   :  { %90 = vadd.xlane.f32.xlu1 %v89_v18 }
 0x185   :  { %v91_v21 = vpop.xlane.xlu1 %90 }
 0x186   :  { %170 = vlog2.f32 %v91_v21 }
 0x18c   :  { %v171_v23 = vpop.eup %170 }
 0x18d   :  { %v93_v24 = vmul.f32 0.6931472, %v171_v23 }
 0x18f   :  { %v94_v25 = vadd.f32 %v93_v24, %v84_v13 }
 0x191   :  { %v100_v26 = vsel %vm99_vm3, %v94_v25, 0.0 }
 0x192   :  { %v102_v27 = vsel %vm101_vm4, %v100_v26, 0.0 }
 0x193   :  { %103 = vadd.xlane.f32.xlu1 %v102_v27 }
 0x206   :  { %v104_v35 = vpop.xlane.xlu1 %103 }
 0x207   :  { %v105_v37 = vrot.slane %v104_v35, 4 }
 0x209   :  { %v106_v38 = vadd.f32 %v105_v37, %v104_v35 }
 0x20b   :  { %v107_v41 = vrot.slane %v106_v38, 2 }
 0x20d   :  { %v108_v42 = vadd.f32 %v107_v41, %v106_v38 }
 0x20f   :  { %v109_v44 = vrot.slane %v108_v42, 1 }
 0x211   :  { %v110_v46 = vadd.f32 %v109_v44, %v108_v42 }
 0x213   :  { %159 = vpush %v110_v46 }
 0x214   :  { %161 = vpush %v121_v47 }
 0x215   :  { %163 = vpush %v132_v48 }
 0x244   :  { %s160_s0 = spop %159 }
 0x245   :  { %s162_s1 = spop %161 }
 0x246   :  { %s164_s19 = spop %163 }
 0x247   :  { %s134_s20 = sadd.f32 %s164_s19, %s162_s1 }
 0x249   :  { %s135_s23 = smul.f32 0.2, %s134_s20 }
 0x24b   :  { %s136_s27 = sadd.f32 %s160_s0, %s135_s23 }
 0x24d   :  { %v137_v49 = vstv %s136_s27 }
 0x24e   :  { %138 = vst [vmem:[#allocation7] sm:$0xff] %v137_v49 }
 0x24f   :  { %149 = dma.vmem_to_hbm [thread:$0]  %s145_s22, 128, %s147_s26, [#allocation4]  }
 0x250   :  { %248 = dma.done.wait [#allocation4], 128  }
 0x251   :  { %249 = vsyncadd [#allocation4], 4294967168 }
 0x252   :  { %154 = vsyncpa [#allocation3], 1 }
 0x253   :  { %155 = vsyncpa [#allocation6], 1 }
 0x254   :  { %156 = vsyncpa [#allocation4], 1 }

// kernel: tpu_custom_call.1
= control target key start
LH: loop header
LB: loop body
LE: loop exit
PB: predicated region body
PF: predicated region fallthrough
CT: control target
= control target key end

     0   :  { %7 = vsyncpa [#allocation3], 0  ;;  %s282_s0 = inlined_call_operand.hbm [shape: f32[8,32], index: 0, kind: input, shape index: {}]   ;;  %s283_s1 = inlined_call_operand.hbm [shape: f32[8,32], index: 1, kind: input, shape index: {}]   ;;  %s284_s2 = inlined_call_operand.hbm [shape: f32[1,8,128], index: 2, kind: output, shape index: {}]  }
   0x1   :  { %8 = vsyncpa [#allocation6], 0 }
   0x2   :  { %9 = vsyncpa [#allocation4], 0  ;;  %s15_s11 = sshll.u32 %s282_s0, 4  ;;  %s250_s12 = smov [#allocation2]   ;;  %s16_s11 = int_to_ptr.hbm [resolvable:$true] %s15_s11 }
   0x3   :  { %s17_s13 = sshll.u32 %s250_s12, 4  ;;  %s26_s16 = sshll.u32 %s283_s1, 4  ;;  %s18_s13 = int_to_ptr.vmem [resolvable:$true] %s17_s13  ;;  %s27_s16 = int_to_ptr.hbm [resolvable:$true] %s26_s16 }
   0x4   :  { %20 = dma.hbm_to_vmem [thread:$0]  %s16_s11, 128, %s18_s13, [#allocation3]  }
   0x5   :  { %s251_s17 = smov [#allocation5]  }
   0x6   :  { %s28_s18 = sshll.u32 %s251_s17, 4  ;;  %s29_s18 = int_to_ptr.vmem [resolvable:$true] %s28_s18 }
   0x7   :  { %31 = dma.hbm_to_vmem [thread:$0]  %s27_s16, 128, %s29_s18, [#allocation6]  }
   0x8   :  { %244 = dma.done.wait [#allocation3], 128  }
   0x9   :  { %245 = vsyncadd [#allocation3], 4294967168 }
   0xa   :  { %246 = dma.done.wait [#allocation6], 128  }
   0xb   :  { %247 = vsyncadd [#allocation6], 4294967168  ;;  %vm42_vm0 = vcmask 261120   ;;  %v41_v0 = vld [vmem:[#allocation5] sm:$0xff]  ;;  %v40_v1 = vld [vmem:[#allocation2] sm:$0xff]  ;;  %v77_v4 = vlaneseq  ;;  %vm81_vm2 = vcmask 64512  }
   0xc   :  { %157 = vmatpush.xpose.msk.msra.mxu0 %vm42_vm0, %v41_v0  ;;  %v72_v2 = vmul.f32 %v41_v0, %v40_v1  ;;  %v112_v11 = vmul.f32 %v40_v1, %v40_v1  ;;  %v123_v19 = vmul.f32 %v41_v0, %v41_v0  ;;  %vm101_vm4 = vcmask 7168   ;;  %s252_s21 = smov [#allocation7]   ;;  %s146_s26 = sshll.u32 %s284_s2, 4  ;;  %s147_s26 = int_to_ptr.hbm [resolvable:$true] %s146_s26 }
   0xd   :  { %v78_v5 = vand.u32 127, %v77_v4  ;;  %v96_v22 = vshrl.u32 %v77_v4, 7  ;;  %s144_s22 = sshll.u32 %s252_s21, 4  ;;  %s145_s22 = int_to_ptr.vmem [resolvable:$true] %s144_s22 }
   0xe   :  { %v73_v3 = vsel %vm42_vm0, %v72_v2, 0.0  ;;  %v113_v12 = vsel %vm42_vm0, %v112_v11, 0.0  ;;  %v124_v20 = vsel %vm42_vm0, %v123_v19, 0.0 }
   0xf   :  { %158 = vmatmul.msk.f32.vlgmr.msra.gmra.mxu0 %vm42_vm0, %v40_v1  ;;  %74 = vadd.xlane.f32.xlu0 %v73_v3  ;;  %vm79_vm1 = vcmp.lt.s32.totalorder %v78_v5, 4  ;;  %vm99_vm3 = vcmp.lt.s32.totalorder %v96_v22, 4 }
  0x10   :  { %114 = vadd.xlane.f32.xlu2 %v113_v12 }
  0x18   :  { %125 = vadd.xlane.f32.xlu2 %v124_v20 }
  0x82   :  { %v75_v6 = vpop.xlane.xlu0 %74 }
  0x83   :  { %v115_v28 = vpop.xlane.xlu2 %114 }
  0x84   :  { %v116_v30 = vrot.slane %v115_v28, 4 }
  0x86   :  { %v117_v32 = vadd.f32 %v116_v30, %v115_v28 }
  0x88   :  { %v118_v34 = vrot.slane %v117_v32, 2 }
  0x8a   :  { %v119_v39 = vadd.f32 %v118_v34, %v117_v32 }
  0x8b   :  { %v126_v29 = vpop.xlane.xlu2 %125 }
  0x8c   :  { %v66_v7 = vpop.f32.mrf.mxu0  ;;  %v127_v31 = vrot.slane %v126_v29, 4  ;;  %v120_v43 = vrot.slane %v119_v39, 1 }
  0x8d   :  { %v76_v8 = vsub.f32 %v66_v7, %v75_v6 }
  0x8e   :  { %v128_v33 = vadd.f32 %v127_v31, %v126_v29  ;;  %v121_v47 = vadd.f32 %v120_v43, %v119_v39 }
  0x8f   :  { %v80_v9 = vsel %vm79_vm1, %v76_v8, -inf }
  0x90   :  { %v82_v10 = vsel %vm81_vm2, %v80_v9, -inf  ;;  %v129_v36 = vrot.slane %v128_v33, 2 }
  0x91   :  { %83 = vmax.xlane.f32.xlu0 %v82_v10 }
  0x92   :  { %v130_v40 = vadd.f32 %v129_v36, %v128_v33 }
  0x94   :  { %v131_v45 = vrot.slane %v130_v40, 1 }
  0x96   :  { %v132_v48 = vadd.f32 %v131_v45, %v130_v40 }
 0x104   :  { %v84_v13 = vpop.xlane.xlu0 %83 }
 0x105   :  { %v85_v14 = vsub.f32 %v76_v8, %v84_v13 }
 0x107   :  { %v86_v15 = vmul.f32 1.442695, %v85_v14 }
 0x109   :  { %168 = vpow2.f32 %v86_v15 }
 0x10f   :  { %v169_v16 = vpop.eup %168 }
 0x110   :  { %v88_v17 = vsel %vm79_vm1, %v169_v16, 0.0 }
 0x111   :  { %v89_v18 = vsel %vm81_vm2, %v88_v17, 0.0 }
 0x112   :  { %90 = vadd.xlane.f32.xlu1 %v89_v18 }
 0x185   :  { %v91_v21 = vpop.xlane.xlu1 %90 }
 0x186   :  { %170 = vlog2.f32 %v91_v21 }
 0x18c   :  { %v171_v23 = vpop.eup %170 }
 0x18d   :  { %v93_v24 = vmul.f32 0.6931472, %v171_v23 }
 0x18f   :  { %v94_v25 = vadd.f32 %v93_v24, %v84_v13 }
 0x191   :  { %v100_v26 = vsel %vm99_vm3, %v94_v25, 0.0 }
 0x192   :  { %v102_v27 = vsel %vm101_vm4, %v100_v26, 0.0 }
 0x193   :  { %103 = vadd.xlane.f32.xlu1 %v102_v27 }
 0x206   :  { %v104_v35 = vpop.xlane.xlu1 %103 }
 0x207   :  { %v105_v37 = vrot.slane %v104_v35, 4 }
 0x209   :  { %v106_v38 = vadd.f32 %v105_v37, %v104_v35 }
 0x20b   :  { %v107_v41 = vrot.slane %v106_v38, 2 }
 0x20d   :  { %v108_v42 = vadd.f32 %v107_v41, %v106_v38 }
 0x20f   :  { %v109_v44 = vrot.slane %v108_v42, 1 }
 0x211   :  { %v110_v46 = vadd.f32 %v109_v44, %v108_v42 }
 0x213   :  { %159 = vpush %v110_v46 }
 0x214   :  { %161 = vpush %v121_v47 }
 0x215   :  { %163 = vpush %v132_v48 }
 0x244   :  { %s160_s0 = spop %159 }
 0x245   :  { %s162_s1 = spop %161 }
 0x246   :  { %s164_s19 = spop %163 }
 0x247   :  { %s134_s20 = sadd.f32 %s164_s19, %s162_s1 }
 0x249   :  { %s135_s23 = smul.f32 0.2, %s134_s20 }
 0x24b   :  { %s136_s27 = sadd.f32 %s160_s0, %s135_s23 }
 0x24d   :  { %v137_v49 = vstv %s136_s27 }
 0x24e   :  { %138 = vst [vmem:[#allocation7] sm:$0xff] %v137_v49 }
 0x24f   :  { %149 = dma.vmem_to_hbm [thread:$0]  %s145_s22, 128, %s147_s26, [#allocation4]  }
 0x250   :  { %248 = dma.done.wait [#allocation4], 128  }
 0x251   :  { %249 = vsyncadd [#allocation4], 4294967168 }
 0x252   :  { %154 = vsyncpa [#allocation3], 1 }
 0x253   :  { %155 = vsyncpa [#allocation6], 1 }
 0x254   :  { %156 = vsyncpa [#allocation4], 1 }

</bundles_post_ra>
